<compile_context>
chip_gen: v6e
topology: v6e:2x2x1
jax: 0.10.0
libtpu: 0.0.40
codegen_flags: <defaults>
</compile_context>

<pallas_src>
import jax
import jax.numpy as jnp
import numpy as np
from jax.experimental import pallas as pl
from jax.experimental.pallas import tpu as pltpu


def _model_kernel(xcol_ref, pool_ref, wc_ref, bc_ref, wf_ref, bf_ref,
                  feat_ref, logit_ref):
    """One batch tile of B samples.

    xcol_ref : (B*H*W, KP)   im2col'd input rows (contraction dim zero-padded)
    pool_ref : (B, B*H*W)    block-diagonal 1/(H*W) pooling matrix
    wc_ref   : (KP, F)       conv taps stacked along rows (zero-padded rows)
    bc_ref   : (1, F)        conv bias
    wf_ref   : (F, CP)       fc weight (classes zero-padded to 128 lanes)
    bf_ref   : (1, CP)       fc bias   (zero-padded)
    feat_ref : (B, F)        pooled features out
    logit_ref: (B, CP)       logits out (padded; sliced in the wrapper)
    """
    # Single fused MXU pass for the whole tile: conv-as-matmul.
    acc = jnp.dot(xcol_ref[...], wc_ref[...], preferred_element_type=jnp.float32)
    acc = jnp.maximum(acc + bc_ref[...], 0.0)                 # bias + ReLU
    # Global average pool as a matmul (keeps everything on the MXU, no reshape).
    pooled = jnp.dot(pool_ref[...], acc, preferred_element_type=jnp.float32)
    feat_ref[...] = pooled
    # Batched fc over the whole tile.
    logit_ref[...] = (jnp.dot(pooled, wf_ref[...],
                              preferred_element_type=jnp.float32) + bf_ref[...])


def my_custom_model_forward(x_nchw, wconv, bconv, wfc, bfc):
    """Forward pass of myCustomModel. Returns (features, logits)."""
    N, C, H, W = x_nchw.shape
    F = wconv.shape[-1]           # features_len
    classes = wfc.shape[-1]
    HW = H * W
    K = 9 * C
    KP = 128                      # pad contraction dim once -> lane-dense operand
    CP = 128                      # pad classes to a full lane width, slice later

    # Batch tile: whole batch per step for tiny N, 8 samples per step otherwise
    # (keeps a 'parallel' batch-tile grid axis so v7x megacore can split it).
    bt = N if N <= 8 else 8
    assert N % bt == 0, "batch must be divisible by the batch tile"

    # ---- wrapper-side glue (cheap one-shot XLA ops, outside the kernel) ----
    x_nhwc = jnp.transpose(x_nchw, (0, 2, 3, 1)).astype(jnp.float32)
    xp = jnp.pad(x_nhwc, ((0, 0), (1, 1), (1, 1), (0, 0)))
    # im2col: tap-major, channel-minor -> matches wconv.reshape(9*C, F) row order.
    taps = [xp[:, dh:dh + H, dw:dw + W, :] for dh in range(3) for dw in range(3)]
    xcol = jnp.concatenate(taps, axis=-1).reshape(N * HW, K)
    xcol = jnp.pad(xcol, ((0, 0), (0, KP - K)))                          # (N*HW, KP)

    wc2d = jnp.pad(wconv.reshape(K, F).astype(jnp.float32),
                   ((0, KP - K), (0, 0)))                                # (KP, F)
    bc2d = bconv.reshape(1, F).astype(jnp.float32)
    wf2d = jnp.pad(wfc.astype(jnp.float32), ((0, 0), (0, CP - classes)))
    bf2d = jnp.pad(bfc.reshape(1, classes).astype(jnp.float32),
                   ((0, 0), (0, CP - classes)))

    # Block-diagonal pooling matrix: pooled[i] = mean over sample i's H*W rows.
    pool_np = np.kron(np.eye(bt, dtype=np.float32),
                      np.full((1, HW), 1.0 / HW, dtype=np.float32))      # (bt, bt*HW)
    pool = jnp.asarray(pool_np)

    feats, logits_p = pl.pallas_call(
        _model_kernel,
        out_shape=(
            jax.ShapeDtypeStruct((N, F), jnp.float32),
            jax.ShapeDtypeStruct((N, CP), jnp.float32),
        ),
        grid_spec=pltpu.PrefetchScalarGridSpec(
            num_scalar_prefetch=0,
            grid=(N // bt,),
            in_specs=[
                pl.BlockSpec((bt * HW, KP), lambda n: (n, 0)),
                pl.BlockSpec((bt, bt * HW), lambda n: (0, 0)),
                pl.BlockSpec((KP, F), lambda n: (0, 0)),
                pl.BlockSpec((1, F), lambda n: (0, 0)),
                pl.BlockSpec((F, CP), lambda n: (0, 0)),
                pl.BlockSpec((1, CP), lambda n: (0, 0)),
            ],
            out_specs=[
                pl.BlockSpec((bt, F), lambda n: (n, 0)),
                pl.BlockSpec((bt, CP), lambda n: (n, 0)),
            ],
        ),
        compiler_params=pltpu.CompilerParams(
            dimension_semantics=("parallel",)),
    )(xcol, pool, wc2d, bc2d, wf2d, bf2d)

    return feats, logits_p[:, :classes]


def _reference(x_nchw, wconv, bconv, wfc, bfc):
    """Pure-JAX reference of the same forward pass (for correctness check)."""
    x = jnp.transpose(x_nchw, (0, 2, 3, 1)).astype(jnp.float32)
    xp = jnp.pad(x, ((0, 0), (1, 1), (1, 1), (0, 0)))
    N, H, W, C = x.shape
    F = wconv.shape[-1]
    acc = jnp.zeros((N, H, W, F), jnp.float32)
    for dh in range(3):
        for dw in range(3):
            acc = acc + jnp.einsum('nhwc,cf->nhwf',
                                   xp[:, dh:dh + H, dw:dw + W, :], wconv[dh, dw])
    acc = jnp.maximum(acc + bconv, 0.0)
    feats = acc.mean(axis=(1, 2))
    logits = feats @ wfc + bfc
    return feats, logits


if __name__ == "__main__":
    # Small shapes consistent with the module's forward.
    N, C_IN, H, W = 2, 4, 16, 16
    FEATURES_LEN = 32          # features_len
    CLASSES = 10               # classes

    key = jax.random.PRNGKey(0)
    k_x, k_wc, k_bc, k_wf, k_bf = jax.random.split(key, 5)

    x = jax.random.normal(k_x, (N, C_IN, H, W), dtype=jnp.float32)
    # Deterministic synthetic parameters (the original code would load a checkpoint).
    wconv = 0.1 * jax.random.normal(k_wc, (3, 3, C_IN, FEATURES_LEN), dtype=jnp.float32)
    bconv = 0.05 * jax.random.normal(k_bc, (FEATURES_LEN,), dtype=jnp.float32)
    wfc = 0.1 * jax.random.normal(k_wf, (FEATURES_LEN, CLASSES), dtype=jnp.float32)
    bfc = 0.05 * jax.random.normal(k_bf, (CLASSES,), dtype=jnp.float32)

    feats, logits = jax.jit(my_custom_model_forward)(x, wconv, bconv, wfc, bfc)
    jax.block_until_ready((feats, logits))

    ref_feats, ref_logits = _reference(x, wconv, bconv, wfc, bfc)
    # Tightened vs. the previous 2e-2: small margin left only for MXU precision
    # mode differences between the Pallas matmul and the XLA reference einsum.
    np.testing.assert_allclose(np.asarray(feats), np.asarray(ref_feats),
                               rtol=2e-3, atol=2e-3)
    np.testing.assert_allclose(np.asarray(logits), np.asarray(ref_logits),
                               rtol=2e-3, atol=2e-3)

    assert feats.shape == (N, FEATURES_LEN) and logits.shape == (N, CLASSES)
    print("KERNEL_OK")
</pallas_src>

<mosaic_0001>
module attributes {stable_mosaic.version = 11 : i64} {
  func.func @_model_kernel(%arg0: i32, %arg1: memref<512x128xf32, #tpu.memory_space<vmem>>, %arg2: memref<2x512xf32, #tpu.memory_space<vmem>>, %arg3: memref<128x32xf32, #tpu.memory_space<vmem>>, %arg4: memref<1x32xf32, #tpu.memory_space<vmem>>, %arg5: memref<32x128xf32, #tpu.memory_space<vmem>>, %arg6: memref<1x128xf32, #tpu.memory_space<vmem>>, %arg7: memref<2x32xf32, #tpu.memory_space<vmem>>, %arg8: memref<2x128xf32, #tpu.memory_space<vmem>>) attributes {dimension_semantics = [#tpu.dimension_semantics<parallel>], iteration_bounds = array<i64: 1>, scalar_prefetch = 0 : i64, scratch_operands = 0 : i64, tpu.core_type = #tpu.core_type<tc>, window_params = [{transform_indices = @transform_0, window_bounds = array<i64: 512, 128>}, {pipeline_mode = #tpu.pipeline_mode<synchronous>, transform_indices = @transform_1, window_bounds = array<i64: 2, 512>}, {pipeline_mode = #tpu.pipeline_mode<synchronous>, transform_indices = @transform_2, window_bounds = array<i64: 128, 32>}, {pipeline_mode = #tpu.pipeline_mode<synchronous>, transform_indices = @transform_3, window_bounds = array<i64: 1, 32>}, {pipeline_mode = #tpu.pipeline_mode<synchronous>, transform_indices = @transform_4, window_bounds = array<i64: 32, 128>}, {pipeline_mode = #tpu.pipeline_mode<synchronous>, transform_indices = @transform_5, window_bounds = array<i64: 1, 128>}, {transform_indices = @transform_6, window_bounds = array<i64: 2, 32>}, {transform_indices = @transform_7, window_bounds = array<i64: 2, 128>}]} {
    %c0 = arith.constant 0 : index
    %c0_0 = arith.constant 0 : index
    %0 = vector.load %arg1[%c0, %c0_0] : memref<512x128xf32, #tpu.memory_space<vmem>>, vector<512x128xf32>
    %c0_1 = arith.constant 0 : index
    %c0_2 = arith.constant 0 : index
    %1 = vector.load %arg3[%c0_1, %c0_2] : memref<128x32xf32, #tpu.memory_space<vmem>>, vector<128x32xf32>
    %cst = arith.constant dense<0.000000e+00> : vector<512x32xf32>
    %2 = tpu.matmul %0, %1, %cst {dimension_numbers = #tpu.dot_dimension_numbers<[1], [0], [0], [1], [0, 0, 1, 1], [], []>} : vector<512x128xf32>, vector<128x32xf32>, vector<512x32xf32> -> vector<512x32xf32>
    %c0_3 = arith.constant 0 : index
    %c0_4 = arith.constant 0 : index
    %3 = vector.load %arg4[%c0_3, %c0_4] : memref<1x32xf32, #tpu.memory_space<vmem>>, vector<1x32xf32>
    %4 = vector.broadcast %3 : vector<1x32xf32> to vector<512x32xf32>
    %5 = arith.addf %2, %4 : vector<512x32xf32>
    %cst_5 = arith.constant 0.000000e+00 : f32
    %6 = vector.broadcast %cst_5 : f32 to vector<512x32xf32>
    %7 = arith.maximumf %5, %6 : vector<512x32xf32>
    %c0_6 = arith.constant 0 : index
    %c0_7 = arith.constant 0 : index
    %8 = vector.load %arg2[%c0_6, %c0_7] : memref<2x512xf32, #tpu.memory_space<vmem>>, vector<2x512xf32>
    %cst_8 = arith.constant dense<0.000000e+00> : vector<2x32xf32>
    %9 = tpu.matmul %8, %7, %cst_8 {dimension_numbers = #tpu.dot_dimension_numbers<[1], [0], [0], [1], [0, 0, 1, 1], [], []>} : vector<2x512xf32>, vector<512x32xf32>, vector<2x32xf32> -> vector<2x32xf32>
    %c0_9 = arith.constant 0 : index
    %c0_10 = arith.constant 0 : index
    %10 = vector.load %arg7[%c0_9, %c0_10] : memref<2x32xf32, #tpu.memory_space<vmem>>, vector<2x32xf32>
    tpu.vector_store %arg7[%c0_9, %c0_10], %9 {strides = array<i32>} : memref<2x32xf32, #tpu.memory_space<vmem>>, vector<2x32xf32>,
    %c0_11 = arith.constant 0 : index
    %c0_12 = arith.constant 0 : index
    %11 = vector.load %arg5[%c0_11, %c0_12] : memref<32x128xf32, #tpu.memory_space<vmem>>, vector<32x128xf32>
    %cst_13 = arith.constant dense<0.000000e+00> : vector<2x128xf32>
    %12 = tpu.matmul %9, %11, %cst_13 {dimension_numbers = #tpu.dot_dimension_numbers<[1], [0], [0], [1], [0, 0, 1, 1], [], []>} : vector<2x32xf32>, vector<32x128xf32>, vector<2x128xf32> -> vector<2x128xf32>
    %c0_14 = arith.constant 0 : index
    %c0_15 = arith.constant 0 : index
    %13 = vector.load %arg6[%c0_14, %c0_15] : memref<1x128xf32, #tpu.memory_space<vmem>>, vector<1x128xf32>
    %14 = vector.broadcast %13 : vector<1x128xf32> to vector<2x128xf32>
    %15 = arith.addf %12, %14 : vector<2x128xf32>
    %c0_16 = arith.constant 0 : index
    %c0_17 = arith.constant 0 : index
    %16 = vector.load %arg8[%c0_16, %c0_17] : memref<2x128xf32, #tpu.memory_space<vmem>>, vector<2x128xf32>
    tpu.vector_store %arg8[%c0_16, %c0_17], %15 {strides = array<i32>} : memref<2x128xf32, #tpu.memory_space<vmem>>, vector<2x128xf32>,
    return
  }
  func.func @transform_0(%arg0: i32) -> (i32, i32) {
    %c0_i32 = arith.constant 0 : i32
    %c0_i32_0 = arith.constant 0 : i32
    return %arg0, %c0_i32 : i32, i32
  }
  func.func @transform_1(%arg0: i32) -> (i32, i32) {
    %c0_i32 = arith.constant 0 : i32
    %c0_i32_0 = arith.constant 0 : i32
    %c0_i32_1 = arith.constant 0 : i32
    return %c0_i32, %c0_i32_0 : i32, i32
  }
  func.func @transform_2(%arg0: i32) -> (i32, i32) {
    %c0_i32 = arith.constant 0 : i32
    %c0_i32_0 = arith.constant 0 : i32
    %c0_i32_1 = arith.constant 0 : i32
    return %c0_i32, %c0_i32_0 : i32, i32
  }
  func.func @transform_3(%arg0: i32) -> (i32, i32) {
    %c0_i32 = arith.constant 0 : i32
    %c0_i32_0 = arith.constant 0 : i32
    %c0_i32_1 = arith.constant 0 : i32
    return %c0_i32, %c0_i32_0 : i32, i32
  }
  func.func @transform_4(%arg0: i32) -> (i32, i32) {
    %c0_i32 = arith.constant 0 : i32
    %c0_i32_0 = arith.constant 0 : i32
    %c0_i32_1 = arith.constant 0 : i32
    return %c0_i32, %c0_i32_0 : i32, i32
  }
  func.func @transform_5(%arg0: i32) -> (i32, i32) {
    %c0_i32 = arith.constant 0 : i32
    %c0_i32_0 = arith.constant 0 : i32
    %c0_i32_1 = arith.constant 0 : i32
    return %c0_i32, %c0_i32_0 : i32, i32
  }
  func.func @transform_6(%arg0: i32) -> (i32, i32) {
    %c0_i32 = arith.constant 0 : i32
    %c0_i32_0 = arith.constant 0 : i32
    return %arg0, %c0_i32 : i32, i32
  }
  func.func @transform_7(%arg0: i32) -> (i32, i32) {
    %c0_i32 = arith.constant 0 : i32
    %c0_i32_0 = arith.constant 0 : i32
    return %arg0, %c0_i32 : i32, i32
  }
}

</mosaic_0001>

<bundles_post_ra>
// kernel: my_custom_model_forward.1
= control target key start
LH: loop header
LB: loop body
LE: loop exit
PB: predicated region body
PF: predicated region fallthrough
CT: control target
= control target key end

     0   :  { %13 = vsyncpa [#allocation3], 0  ;;  %s1732_s0 = inlined_call_operand.vmem [shape: f32[512,128], index: 0, kind: input, shape index: {}]   ;;  %s1733_s1 = inlined_call_operand.vmem [shape: f32[2,512], index: 1, kind: input, shape index: {}]   ;;  %s1734_s2 = inlined_call_operand.vmem [shape: f32[128,32], index: 2, kind: input, shape index: {}]   ;;  %s1735_s3 = inlined_call_operand.vmem [shape: f32[1,32], index: 3, kind: input, shape index: {}]   ;;  %s1736_s4 = inlined_call_operand.vmem [shape: f32[32,128], index: 4, kind: input, shape index: {}]   ;;  %s1737_s5 = inlined_call_operand.vmem [shape: f32[1,128], index: 5, kind: input, shape index: {}]   ;;  %s1738_s6 = inlined_call_operand.hbm [shape: f32[2,32], index: 6, kind: output, shape index: {0}]   ;;  %s1739_s7 = inlined_call_operand.hbm [shape: f32[2,128], index: 7, kind: output, shape index: {1}]  }
   0x1   :  { %v106_v0 = vld [vmem:[%s1734_s2 + $0x78] sm:$0xff]  ;;  %v105_v1 = vld [vmem:[%s1734_s2 + $0x70] sm:$0xff]  ;;  %v104_v2 = vld [vmem:[%s1734_s2 + $0x68] sm:$0xff] }
   0x2   :  { %1000 = vmatprep.subr.mxu0 %v106_v0  ;;  %1139 = vmatprep.subr.mxu1 %v106_v0  ;;  %v103_v3 = vld [vmem:[%s1734_s2 + $0x60] sm:$0xff]  ;;  %v102_v5 = vld [vmem:[%s1734_s2 + $0x58] sm:$0xff]  ;;  %v101_v6 = vld [vmem:[%s1734_s2 + $0x50] sm:$0xff] }
   0x3   :  { %1001 = vmatpush3.msra.mxu0 %v106_v0  ;;  %1155 = vmatpush3.msra.mxu1 %v106_v0  ;;  %v27_v4 = vld [vmem:[%s1732_s0] sm:$0xff]  ;;  %v100_v7 = vld [vmem:[%s1734_s2 + $0x48] sm:$0xff]  ;;  %v98_v9 = vld [vmem:[%s1734_s2 + $0x38] sm:$0xff] }
   0x4   :  { %1002 = vmatprep.subr.mxu0 %v105_v1  ;;  %1140 = vmatprep.subr.mxu1 %v105_v1  ;;  %v99_v8 = vld [vmem:[%s1734_s2 + $0x40] sm:$0xff]  ;;  %v97_v10 = vld [vmem:[%s1734_s2 + $0x30] sm:$0xff]  ;;  %v96_v11 = vld [vmem:[%s1734_s2 + $0x28] sm:$0xff] }
   0x5   :  { %1003 = vmatpush3.msra.mxu0 %v105_v1  ;;  %1156 = vmatpush3.msra.mxu1 %v105_v1  ;;  %v95_v12 = vld [vmem:[%s1734_s2 + $0x20] sm:$0xff]  ;;  %v94_v13 = vld [vmem:[%s1734_s2 + $0x18] sm:$0xff]  ;;  %v93_v14 = vld [vmem:[%s1734_s2 + $0x10] sm:$0xff] }
   0x6   :  { %1004 = vmatprep.subr.mxu0 %v104_v2  ;;  %1141 = vmatprep.subr.mxu1 %v104_v2  ;;  %v92_v15 = vld [vmem:[%s1734_s2 + $0x8] sm:$0xff] }
   0x7   :  { %1005 = vmatpush3.msra.mxu0 %v104_v2  ;;  %1032 = vmatprep.mubr.f32.mxu0 %v27_v4 }
   0x8   :  { %1006 = vmatprep.subr.mxu0 %v103_v3  ;;  %1157 = vmatpush3.msra.mxu1 %v104_v2 }
   0x9   :  { %1007 = vmatpush3.msra.mxu0 %v103_v3  ;;  %1142 = vmatprep.subr.mxu1 %v103_v3 }
   0xa   :  { %1008 = vmatprep.subr.mxu0 %v102_v5  ;;  %1158 = vmatpush3.msra.mxu1 %v103_v3 }
   0xb   :  { %1009 = vmatpush3.msra.mxu0 %v102_v5  ;;  %1143 = vmatprep.subr.mxu1 %v102_v5 }
   0xc   :  { %1010 = vmatprep.subr.mxu0 %v101_v6  ;;  %1159 = vmatpush3.msra.mxu1 %v102_v5 }
   0xd   :  { %1011 = vmatpush3.msra.mxu0 %v101_v6  ;;  %1144 = vmatprep.subr.mxu1 %v101_v6 }
   0xe   :  { %1012 = vmatprep.subr.mxu0 %v100_v7  ;;  %1160 = vmatpush3.msra.mxu1 %v101_v6 }
   0xf   :  { %1013 = vmatpush3.msra.mxu0 %v100_v7  ;;  %1145 = vmatprep.subr.mxu1 %v100_v7 }
  0x10   :  { %1014 = vmatprep.subr.mxu0 %v99_v8  ;;  %1161 = vmatpush3.msra.mxu1 %v100_v7 }
  0x11   :  { %1015 = vmatpush3.msra.mxu0 %v99_v8  ;;  %1146 = vmatprep.subr.mxu1 %v99_v8 }
  0x12   :  { %1016 = vmatprep.subr.mxu0 %v98_v9  ;;  %1162 = vmatpush3.msra.mxu1 %v99_v8 }
  0x13   :  { %1017 = vmatpush3.msra.mxu0 %v98_v9  ;;  %1147 = vmatprep.subr.mxu1 %v98_v9 }
  0x14   :  { %1018 = vmatprep.subr.mxu0 %v97_v10  ;;  %1163 = vmatpush3.msra.mxu1 %v98_v9 }
  0x15   :  { %1019 = vmatpush3.msra.mxu0 %v97_v10  ;;  %1148 = vmatprep.subr.mxu1 %v97_v10 }
  0x16   :  { %1020 = vmatprep.subr.mxu0 %v96_v11  ;;  %1164 = vmatpush3.msra.mxu1 %v97_v10 }
  0x17   :  { %1021 = vmatpush3.msra.mxu0 %v96_v11  ;;  %1149 = vmatprep.subr.mxu1 %v96_v11 }
  0x18   :  { %1022 = vmatprep.subr.mxu0 %v95_v12  ;;  %1165 = vmatpush3.msra.mxu1 %v96_v11 }
  0x19   :  { %1023 = vmatpush3.msra.mxu0 %v95_v12  ;;  %1150 = vmatprep.subr.mxu1 %v95_v12 }
  0x1a   :  { %1024 = vmatprep.subr.mxu0 %v94_v13  ;;  %1166 = vmatpush3.msra.mxu1 %v95_v12 }
  0x1b   :  { %1025 = vmatpush3.msra.mxu0 %v94_v13  ;;  %1151 = vmatprep.subr.mxu1 %v94_v13 }
  0x1c   :  { %14 = vsyncpa [#allocation5], 0  ;;  %1026 = vmatprep.subr.mxu0 %v93_v14  ;;  %1167 = vmatpush3.msra.mxu1 %v94_v13  ;;  %v91_v16 = vld [vmem:[%s1734_s2] sm:$0xff]  ;;  %v28_v17 = vld [vmem:[%s1732_s0 + $0x8] sm:$0xff]  ;;  %vm1223_vm0 = vmmov 0   ;;  %vm739_vm1 = vcmask 261120  }
  0x1d   :  { %1027 = vmatpush3.msra.mxu0 %v93_v14  ;;  %1152 = vmatprep.subr.mxu1 %v93_v14  ;;  %v29_v18 = vld [vmem:[%s1732_s0 + $0x10] sm:$0xff]  ;;  %v71_v19 = vld [vmem:[%s1732_s0 + $0x160] sm:$0xff]  ;;  %v72_v20 = vld [vmem:[%s1732_s0 + $0x168] sm:$0xff]  ;;  %vm726_vm2 = vcmask 254976   ;;  %s1224_s26 = smov [#allocation2]  }
  0x1e   :  { %1028 = vmatprep.subr.mxu0 %v92_v15  ;;  %1168 = vmatpush3.msra.mxu1 %v93_v14  ;;  %v73_v21 = vld [vmem:[%s1732_s0 + $0x170] sm:$0xff]  ;;  %v30_v22 = vld [vmem:[%s1732_s0 + $0x18] sm:$0xff]  ;;  %v31_v23 = vld [vmem:[%s1732_s0 + $0x20] sm:$0xff]  ;;  %s820_s27 = sshll.u32 %s1224_s26, 4  ;;  %s821_s27 = int_to_ptr.vmem [resolvable:$true] %s820_s27 }
  0x1f   :  { %1029 = vmatpush3.msra.mxu0 %v92_v15  ;;  %1153 = vmatprep.subr.mxu1 %v92_v15  ;;  %v74_v24 = vld [vmem:[%s1732_s0 + $0x178] sm:$0xff]  ;;  %v75_v25 = vld [vmem:[%s1732_s0 + $0x180] sm:$0xff]  ;;  %v32_v26 = vld [vmem:[%s1732_s0 + $0x28] sm:$0xff]  ;;  %s1177_s28 = scalar_lea.vmem %s821_s27, 32  ;;  %p1182_p1 = scmp.lt.s32.totalorder %s821_s27, %s821_s27 }
  0x20   :  { %1030 = vmatprep.subr.mxu0 %v91_v16  ;;  %1169 = vmatpush3.msra.mxu1 %v92_v15  ;;  %v33_v27 = vld [vmem:[%s1732_s0 + $0x30] sm:$0xff]  ;;  %v76_v28 = vld [vmem:[%s1732_s0 + $0x188] sm:$0xff]  ;;  %v34_v30 = vld [vmem:[%s1732_s0 + $0x38] sm:$0xff]  ;;  %p1178_p0 = scmp.ne.s32.totalorder %s821_s27, %s1177_s28  ;;  %p1183_p2 = scmp.lt.s32.totalorder %s1177_s28, %s1177_s28 }
  0x21   :  { %1031 = vmatpush3.msra.mxu0 %v91_v16  ;;  %1154 = vmatprep.subr.mxu1 %v91_v16  ;;  %v77_v29 = vld [vmem:[%s1732_s0 + $0x190] sm:$0xff]  ;;  %v35_v31 = vld [vmem:[%s1732_s0 + $0x40] sm:$0xff]  ;;  %v78_v32 = vld [vmem:[%s1732_s0 + $0x198] sm:$0xff] }
  0x22   :  { %1033 = vmatmul.mubr.f32.vlgmr.msra.gmra.mxu0 %v28_v17  ;;  %1170 = vmatpush3.msra.mxu1 %v91_v16  ;;  %v79_v33 = vld [vmem:[%s1732_s0 + $0x1a0] sm:$0xff]  ;;  %v36_v34 = vld [vmem:[%s1732_s0 + $0x48] sm:$0xff]  ;;  %v37_v35 = vld [vmem:[%s1732_s0 + $0x50] sm:$0xff]  ;;  %v1221_v16 = vmov 1983009808   ;;  %p1184_p3 = por %p1183_p2, %p1182_p1 }
  0x23   :  { %1035 = vmatprep.mubr.f32.mxu0 %v29_v18  ;;  %1098 = vmatprep.mubr.f32.mxu1 %v71_v19  ;;  %v80_v36 = vld [vmem:[%s1732_s0 + $0x1a8] sm:$0xff]  ;;  %v81_v37 = vld [vmem:[%s1732_s0 + $0x1b0] sm:$0xff]  ;;  %v38_v38 = vld [vmem:[%s1732_s0 + $0x58] sm:$0xff]  ;;  %v567_v17 = vunpack.c.l.s4 %v1221_v16  ;;  %v569_v18 = vlaneseq }
  0x24   :  { %1099 = vmatmul.mubr.f32.vlgmr.msra.gmra.mxu1 %v72_v20  ;;  %v39_v39 = vld [vmem:[%s1732_s0 + $0x60] sm:$0xff]  ;;  %v82_v40 = vld [vmem:[%s1732_s0 + $0x1b8] sm:$0xff]  ;;  %v40_v42 = vld [vmem:[%s1732_s0 + $0x68] sm:$0xff]  ;;  %p1185_p4 = pnand %p1184_p3, %p1178_p0 }
  0x25   :  { %1101 = vmatprep.mubr.f32.mxu1 %v73_v21  ;;  %v83_v41 = vld [vmem:[%s1732_s0 + $0x1c0] sm:$0xff]  ;;  %v41_v43 = vld [vmem:[%s1732_s0 + $0x70] sm:$0xff]  ;;  %v84_v44 = vld [vmem:[%s1732_s0 + $0x1c8] sm:$0xff]  ;;  %v568_v19 = vunpack.c.0.s8 %v567_v17  ;;  %v570_v20 = vshrl.u32 %v569_v18, 7 }
  0x26   :  { %1036 = vmatmul.mubr.f32.gmra.mxu0 %v30_v22  ;;  %v85_v45 = vld [vmem:[%s1732_s0 + $0x1d0] sm:$0xff]  ;;  %v42_v46 = vld [vmem:[%s1732_s0 + $0x78] sm:$0xff]  ;;  %v43_v47 = vld [vmem:[%s1732_s0 + $0x80] sm:$0xff] }
  0x27   :  { %1038 = vmatprep.mubr.f32.mxu0 %v31_v23  ;;  %v86_v48 = vld [vmem:[%s1732_s0 + $0x1d8] sm:$0xff]  ;;  %v87_v49 = vld [vmem:[%s1732_s0 + $0x1e0] sm:$0xff]  ;;  %v44_v50 = vld [vmem:[%s1732_s0 + $0x88] sm:$0xff]  ;;  %v571_v21 = vsub.s32 %v568_v19, %v570_v20 }
  0x28   :  { %1102 = vmatmul.mubr.f32.gmra.mxu1 %v74_v24  ;;  %v45_v51 = vld [vmem:[%s1732_s0 + $0x90] sm:$0xff]  ;;  %v88_v52 = vld [vmem:[%s1732_s0 + $0x1e8] sm:$0xff]  ;;  %v46_v54 = vld [vmem:[%s1732_s0 + $0x98] sm:$0xff] }
  0x29   :  { %1104 = vmatprep.mubr.f32.mxu1 %v75_v25  ;;  %v89_v53 = vld [vmem:[%s1732_s0 + $0x1f0] sm:$0xff]  ;;  %v47_v55 = vld [vmem:[%s1732_s0 + $0xa0] sm:$0xff]  ;;  %v90_v56 = vld [vmem:[%s1732_s0 + $0x1f8] sm:$0xff] }
  0x2a   :  { %1039 = vmatmul.mubr.f32.gmra.mxu0 %v32_v26  ;;  %v48_v57 = vld [vmem:[%s1732_s0 + $0xa8] sm:$0xff]  ;;  %v49_v58 = vld [vmem:[%s1732_s0 + $0xb0] sm:$0xff]  ;;  %v50_v59 = vld [vmem:[%s1732_s0 + $0xb8] sm:$0xff] }
  0x2b   :  { %1041 = vmatprep.mubr.f32.mxu0 %v33_v27  ;;  %v51_v60 = vld [vmem:[%s1732_s0 + $0xc0] sm:$0xff]  ;;  %v52_v61 = vld [vmem:[%s1732_s0 + $0xc8] sm:$0xff]  ;;  %v53_v62 = vld [vmem:[%s1732_s0 + $0xd0] sm:$0xff] }
  0x2c   :  { %1105 = vmatmul.mubr.f32.gmra.mxu1 %v76_v28  ;;  %v54_v63 = vld [vmem:[%s1732_s0 + $0xd8] sm:$0xff]  ;;  %v55_v0 = vld [vmem:[%s1732_s0 + $0xe0] sm:$0xff]  ;;  %v56_v1 = vld [vmem:[%s1732_s0 + $0xe8] sm:$0xff] }
  0x2d   :  { %1107 = vmatprep.mubr.f32.mxu1 %v77_v29  ;;  %v57_v2 = vld [vmem:[%s1732_s0 + $0xf0] sm:$0xff]  ;;  %v58_v3 = vld [vmem:[%s1732_s0 + $0xf8] sm:$0xff]  ;;  %v59_v4 = vld [vmem:[%s1732_s0 + $0x100] sm:$0xff] }
  0x2e   :  { %1042 = vmatmul.mubr.f32.gmra.mxu0 %v34_v30  ;;  %v60_v5 = vld [vmem:[%s1732_s0 + $0x108] sm:$0xff]  ;;  %v61_v6 = vld [vmem:[%s1732_s0 + $0x110] sm:$0xff]  ;;  %v62_v7 = vld [vmem:[%s1732_s0 + $0x118] sm:$0xff] }
  0x2f   :  { %1044 = vmatprep.mubr.f32.mxu0 %v35_v31  ;;  %v63_v8 = vld [vmem:[%s1732_s0 + $0x120] sm:$0xff]  ;;  %v64_v9 = vld [vmem:[%s1732_s0 + $0x128] sm:$0xff]  ;;  %v65_v10 = vld [vmem:[%s1732_s0 + $0x130] sm:$0xff] }
  0x30   :  { %1108 = vmatmul.mubr.f32.gmra.mxu1 %v78_v32  ;;  %v66_v11 = vld [vmem:[%s1732_s0 + $0x138] sm:$0xff]  ;;  %v67_v12 = vld [vmem:[%s1732_s0 + $0x140] sm:$0xff]  ;;  %v68_v13 = vld [vmem:[%s1732_s0 + $0x148] sm:$0xff] }
  0x31   :  { %1110 = vmatprep.mubr.f32.mxu1 %v79_v33  ;;  %v69_v14 = vld [vmem:[%s1732_s0 + $0x150] sm:$0xff]  ;;  %v70_v15 = vld [vmem:[%s1732_s0 + $0x158] sm:$0xff]  ;;  %v563_v22 = vld [vmem:[%s1733_s1] sm:$0xff] }
  0x32   :  { %1045 = vmatmul.mubr.f32.gmra.mxu0 %v36_v34  ;;  %v1509_v23 = vrot.slane %v563_v22, %v571_v21  ;;  %v565_v25 = vcombine.high %v563_v22, %v563_v22 }
  0x33   :  { %1047 = vmatprep.mubr.f32.mxu0 %v37_v35 }
  0x34   :  { %1111 = vmatmul.mubr.f32.gmra.mxu1 %v80_v36  ;;  %v580_v24 = vcombine.high %v1509_v23, %v1509_v23  ;;  %v1513_v26 = vrot.slane %v565_v25, %v571_v21 }
  0x35   :  { %1113 = vmatprep.mubr.f32.mxu1 %v81_v37 }
  0x36   :  { %1048 = vmatmul.mubr.f32.gmra.mxu0 %v38_v38 }
  0x37   :  { %1050 = vmatprep.mubr.f32.mxu0 %v39_v39 }
  0x38   :  { %1114 = vmatmul.mubr.f32.gmra.mxu1 %v82_v40 }
  0x39   :  { %1116 = vmatprep.mubr.f32.mxu1 %v83_v41 }
  0x3a   :  { %1051 = vmatmul.mubr.f32.gmra.mxu0 %v40_v42 }
  0x3b   :  { %1053 = vmatprep.mubr.f32.mxu0 %v41_v43 }
  0x3c   :  { %1117 = vmatmul.mubr.f32.gmra.mxu1 %v84_v44 }
  0x3d   :  { %1119 = vmatprep.mubr.f32.mxu1 %v85_v45 }
  0x3e   :  { %1054 = vmatmul.mubr.f32.gmra.mxu0 %v42_v46 }
  0x3f   :  { %1056 = vmatprep.mubr.f32.mxu0 %v43_v47 }
  0x40   :  { %1120 = vmatmul.mubr.f32.gmra.mxu1 %v86_v48 }
  0x41   :  { %1122 = vmatprep.mubr.f32.mxu1 %v87_v49 }
  0x42   :  { %1057 = vmatmul.mubr.f32.gmra.mxu0 %v44_v50 }
  0x43   :  { %1059 = vmatprep.mubr.f32.mxu0 %v45_v51 }
  0x44   :  { %1123 = vmatmul.mubr.f32.gmra.mxu1 %v88_v52 }
  0x45   :  { %1125 = vmatprep.mubr.f32.mxu1 %v89_v53 }
  0x46   :  { %1060 = vmatmul.mubr.f32.gmra.mxu0 %v46_v54 }
  0x47   :  { %1062 = vmatprep.mubr.f32.mxu0 %v47_v55 }
  0x48   :  { %1126 = vmatmul.mubr.f32.gmra.mxu1 %v90_v56 }
  0x49   :  { %650 = vmatprep.mubr.f32.mxu1 %v580_v24 }
  0x4a   :  { %1063 = vmatmul.mubr.f32.gmra.mxu0 %v48_v57 }
  0x4b   :  { %1065 = vmatprep.mubr.f32.mxu0 %v49_v58 }
  0x4e   :  { %1066 = vmatmul.mubr.f32.gmra.mxu0 %v50_v59 }
  0x4f   :  { %1068 = vmatprep.mubr.f32.mxu0 %v51_v60 }
  0x52   :  { %1069 = vmatmul.mubr.f32.gmra.mxu0 %v52_v61 }
  0x53   :  { %1071 = vmatprep.mubr.f32.mxu0 %v53_v62 }
  0x56   :  { %1072 = vmatmul.mubr.f32.gmra.mxu0 %v54_v63 }
  0x57   :  { %1074 = vmatprep.mubr.f32.mxu0 %v55_v0 }
  0x5a   :  { %1075 = vmatmul.mubr.f32.gmra.mxu0 %v56_v1 }
  0x5b   :  { %1077 = vmatprep.mubr.f32.mxu0 %v57_v2 }
  0x5e   :  { %1078 = vmatmul.mubr.f32.gmra.mxu0 %v58_v3 }
  0x5f   :  { %1080 = vmatprep.mubr.f32.mxu0 %v59_v4 }
  0x62   :  { %1081 = vmatmul.mubr.f32.gmra.mxu0 %v60_v5  ;;  %v1576_v5 = vld [vmem:[%s1735_s3] ss:$0 sm:$0xff] }
  0x63   :  { %1083 = vmatprep.mubr.f32.mxu0 %v61_v6 }
  0x66   :  { %1084 = vmatmul.mubr.f32.gmra.mxu0 %v62_v7 }
  0x67   :  { %1086 = vmatprep.mubr.f32.mxu0 %v63_v8 }
  0x6a   :  { %1087 = vmatmul.mubr.f32.gmra.mxu0 %v64_v9 }
  0x6b   :  { %1089 = vmatprep.mubr.f32.mxu0 %v65_v10 }
  0x6e   :  { %1090 = vmatmul.mubr.f32.gmra.mxu0 %v66_v11 }
  0x6f   :  { %1092 = vmatprep.mubr.f32.mxu0 %v67_v12 }
  0x72   :  { %1093 = vmatmul.mubr.f32.gmra.mxu0 %v68_v13 }
  0x73   :  { %1095 = vmatprep.mubr.f32.mxu0 %v69_v14 }
  0x76   :  { %1096 = vmatmul.mubr.f32.gmra.mxu0 %v70_v15 }
  0xe2   :  { %v1515_v27 = vpop.f32.mrf.mxu0 }
  0xe4   :  { %v1517_v28 = vpop.f32.mrf.mxu0  ;;  %v1531_v35 = vpop.f32.mrf.mxu1 }
  0xe6   :  { %v1519_v29 = vpop.f32.mrf.mxu0  ;;  %v1537_v38 = vpop.f32.mrf.mxu1 }
  0xe8   :  { %v1521_v30 = vpop.f32.mrf.mxu0  ;;  %v1539_v41 = vpop.f32.mrf.mxu1 }
  0xea   :  { %v1523_v31 = vpop.f32.mrf.mxu0  ;;  %v1541_v44 = vpop.f32.mrf.mxu1 }
  0xec   :  { %v1525_v32 = vpop.f32.mrf.mxu0  ;;  %v1543_v47 = vpop.f32.mrf.mxu1 }
  0xee   :  { %v1527_v33 = vpop.f32.mrf.mxu0  ;;  %v1549_v50 = vpop.f32.mrf.mxu1 }
  0xf0   :  { %v1529_v34 = vpop.f32.mrf.mxu0  ;;  %v1555_v53 = vpop.f32.mrf.mxu1 }
  0xf2   :  { %v1533_v36 = vpop.f32.mrf.mxu0  ;;  %v1561_v56 = vpop.f32.mrf.mxu1 }
  0xf4   :  { %v1535_v37 = vpop.f32.mrf.mxu0  ;;  %v1565_v59 = vpop.f32.mrf.mxu1 }
  0xf6   :  { %v1049_v39 = vpop.f32.mrf.mxu0  ;;  %v1567_v62 = vpop.f32.mrf.mxu1 }
  0xf8   :  { %v230_v40 = vpop.f32.mrf.mxu0  ;;  %v1569_v1 = vpop.f32.mrf.mxu1 }
  0xfa   :  { %v1052_v42 = vpop.f32.mrf.mxu0  ;;  %v1571_v4 = vpop.f32.mrf.mxu1 }
  0xfb   :  { %v246_v15 = vadd.f32 %v1052_v42, %v1576_v5  ;;  %v236_v42 = vadd.f32 %v1049_v39, %v1576_v5  ;;  %v226_v39 = vadd.f32 %v1533_v36, %v1576_v5 }
  0xfc   :  { %v240_v43 = vpop.f32.mrf.mxu0  ;;  %v1581_v11 = vpop.f32.mrf.mxu1 }
  0xfd   :  { %v241_v20 = vadd.f32 %v1576_v5, %v240_v43  ;;  %v231_v43 = vadd.f32 %v1576_v5, %v230_v40 }
  0xfe   :  { %v1055_v45 = vpop.f32.mrf.mxu0  ;;  %v1590_v22 = vpop.f32.mrf.mxu1 }
  0xff   :  { %v256_v6 = vadd.f32 %v1055_v45, %v1576_v5 }
 0x100   :  { %v250_v46 = vpop.f32.mrf.mxu0 }
 0x101   :  { %v251_v9 = vadd.f32 %v1576_v5, %v250_v46  ;;  %v514_v16 = vmax.f32 %v256_v6, 0.0  ;;  %v512_v46 = vmax.f32 %v246_v15, 0.0  ;;  %v509_v15 = vmax.f32 %v231_v43, 0.0 }
 0x102   :  { %v1545_v48 = vpop.f32.mrf.mxu0 }
 0x103   :  { %v513_v21 = vmax.f32 %v251_v9, 0.0 }
 0x104   :  { %v1547_v49 = vpop.f32.mrf.mxu0 }
 0x106   :  { %v1551_v51 = vpop.f32.mrf.mxu0 }
 0x108   :  { %v1553_v52 = vpop.f32.mrf.mxu0 }
 0x10a   :  { %v1557_v54 = vpop.f32.mrf.mxu0 }
 0x10c   :  { %v1559_v55 = vpop.f32.mrf.mxu0 }
 0x10e   :  { %v1067_v57 = vpop.f32.mrf.mxu0 }
 0x110   :  { %v1563_v58 = vpop.f32.mrf.mxu0 }
 0x112   :  { %v1070_v60 = vpop.f32.mrf.mxu0 }
 0x114   :  { %v300_v61 = vpop.f32.mrf.mxu0 }
 0x116   :  { %v1073_v63 = vpop.f32.mrf.mxu0 }
 0x117   :  { %v316_v25 = vadd.f32 %v1073_v63, %v1576_v5  ;;  %v306_v63 = vadd.f32 %v1070_v60, %v1576_v5  ;;  %v296_v60 = vadd.f32 %v1067_v57, %v1576_v5 }
 0x118   :  { %v310_v0 = vpop.f32.mrf.mxu0 }
 0x11a   :  { %v1076_v2 = vpop.f32.mrf.mxu0 }
 0x11b   :  { %v326_v12 = vadd.f32 %v1076_v2, %v1576_v5 }
 0x11c   :  { %v320_v3 = vpop.f32.mrf.mxu0 }
 0x11d   :  { %v321_v18 = vadd.f32 %v1576_v5, %v320_v3  ;;  %v528_v45 = vmax.f32 %v326_v12, 0.0  ;;  %v311_v3 = vadd.f32 %v1576_v5, %v310_v0  ;;  %v510_v12 = vmax.f32 %v236_v42, 0.0 }
 0x11e   :  { %v1079_v7 = vpop.f32.mrf.mxu0  ;;  %v522_v42 = vmax.f32 %v296_v60, 0.0 }
 0x11f   :  { %v336_v8 = vadd.f32 %v1079_v7, %v1576_v5  ;;  %v527_v6 = vmax.f32 %v321_v18, 0.0  ;;  %v511_v7 = vmax.f32 %v241_v20, 0.0  ;;  %v525_v40 = vmax.f32 %v311_v3, 0.0 }
 0x120   :  { %v330_v10 = vpop.f32.mrf.mxu0  ;;  %v524_v18 = vmax.f32 %v306_v63, 0.0  ;;  %v508_v20 = vmax.f32 %v226_v39, 0.0 }
 0x121   :  { %v530_v13 = vmax.f32 %v336_v8, 0.0  ;;  %v331_v14 = vadd.f32 %v1576_v5, %v330_v10  ;;  %v1600_v8 = vpop.f32.mrf.mxu1  ;;  %v526_v10 = vmax.f32 %v316_v25, 0.0 }
 0x122   :  { %v1586_v17 = vpop.f32.mrf.mxu0 }
 0x123   :  { %v529_v19 = vmax.f32 %v331_v14, 0.0  ;;  %925 = vmatprep.subr.mxu1 %v530_v13  ;;  %v301_v13 = vadd.f32 %v1576_v5, %v300_v61  ;;  %v221_v14 = vadd.f32 %v1576_v5, %v1535_v37  ;;  %v291_v61 = vadd.f32 %v1576_v5, %v1563_v58 }
 0x124   :  { %926 = vmatpush3.msra.mxu1 %v514_v16  ;;  %v1592_v24 = vpop.f32.mrf.mxu0  ;;  %v1612_v16 = vpop.f32.mrf.mxu1  ;;  %v211_v37 = vadd.f32 %v1576_v5, %v1529_v34  ;;  %v281_v58 = vadd.f32 %v1576_v5, %v1559_v55  ;;  %v201_v34 = vadd.f32 %v1576_v5, %v1525_v32  ;;  %v271_v55 = vadd.f32 %v1576_v5, %v1553_v52 }
 0x125   :  { %927 = vmatprep.subr.mxu1 %v529_v19  ;;  %v216_v19 = vadd.f32 %v1527_v33, %v1576_v5  ;;  %v507_v25 = vmax.f32 %v221_v14, 0.0  ;;  %v206_v33 = vadd.f32 %v1523_v31, %v1576_v5  ;;  %v196_v31 = vadd.f32 %v1519_v29, %v1576_v5 }
 0x126   :  { %928 = vmatpush3.msra.mxu1 %v513_v21  ;;  %v1596_v2 = vpop.f32.mrf.mxu0  ;;  %v523_v21 = vmax.f32 %v301_v13, 0.0  ;;  %v1124_v57 = vpop.f32.mrf.mxu1  ;;  %v505_v43 = vmax.f32 %v211_v37, 0.0  ;;  %v191_v32 = vadd.f32 %v1576_v5, %v1521_v30  ;;  %v503_v13 = vmax.f32 %v201_v34, 0.0 }
 0x127   :  { %929 = vmatprep.subr.mxu1 %v528_v45  ;;  %v286_v45 = vadd.f32 %v1557_v54, %v1576_v5  ;;  %v506_v3 = vmax.f32 %v216_v19, 0.0  ;;  %v504_v39 = vmax.f32 %v206_v33, 0.0  ;;  %v186_v29 = vadd.f32 %v1515_v27, %v1576_v5 }
 0x128   :  { %930 = vmatpush3.msra.mxu1 %v512_v46  ;;  %v1602_v9 = vpop.f32.mrf.mxu0  ;;  %v480_v54 = vpop.f32.mrf.mxu1  ;;  %v502_v60 = vmax.f32 %v196_v31, 0.0  ;;  %v261_v52 = vadd.f32 %v1576_v5, %v1547_v49  ;;  %v181_v19 = vadd.f32 %v1576_v5, %v1517_v28  ;;  %v416_v27 = vadd.f32 %v1539_v41, %v1576_v5 }
 0x129   :  { %931 = vmatprep.subr.mxu1 %v527_v6  ;;  %v521_v6 = vmax.f32 %v291_v61, 0.0  ;;  %v520_v63 = vmax.f32 %v286_v45, 0.0  ;;  %v500_v37 = vmax.f32 %v186_v29, 0.0  ;;  %v411_v28 = vadd.f32 %v1576_v5, %v1541_v44 }
 0x12a   :  { %932 = vmatpush3.msra.mxu1 %v511_v7  ;;  %v1607_v0 = vpop.f32.mrf.mxu0  ;;  %v276_v7 = vadd.f32 %v1551_v51, %v1576_v5  ;;  %v1127_v51 = vpop.f32.mrf.mxu1  ;;  %v581_v33 = vcombine.high %v1513_v26, %v1513_v26  ;;  %v406_v41 = vadd.f32 %v1531_v35, %v1576_v5  ;;  %v481_v34 = vadd.f32 %v1576_v5, %v480_v54 }
 0x12b   :  { %933 = vmatprep.subr.mxu1 %v526_v10  ;;  %v496_v30 = vadd.f32 %v1127_v51, %v1576_v5  ;;  %v401_v44 = vadd.f32 %v1576_v5, %v1537_v38  ;;  %v471_v54 = vadd.f32 %v1576_v5, %v1612_v16  ;;  %v461_v51 = vadd.f32 %v1576_v5, %v1590_v22 }
 0x12c   :  { %934 = vmatpush3.msra.mxu1 %v510_v12  ;;  %v1615_v36 = vpop.f32.mrf.mxu0  ;;  %v519_v12 = vmax.f32 %v281_v58, 0.0  ;;  %v518_v14 = vmax.f32 %v276_v7, 0.0  ;;  %v545_v7 = vmax.f32 %v411_v28, 0.0  ;;  %v456_v29 = vadd.f32 %v1569_v1, %v1576_v5 }
 0x12d   :  { %935 = vmatprep.subr.mxu1 %v525_v40  ;;  %v266_v40 = vadd.f32 %v1545_v48, %v1576_v5  ;;  %v490_v48 = vpop.f32.mrf.mxu1  ;;  %v562_v49 = vmax.f32 %v496_v30, 0.0  ;;  %v555_v22 = vmax.f32 %v461_v51, 0.0  ;;  %v446_v1 = vadd.f32 %v1565_v59, %v1576_v5 }
 0x12e   :  { %936 = vmatpush3.msra.mxu1 %v509_v15  ;;  %v1625_v46 = vpop.f32.mrf.mxu0  ;;  %v491_v45 = vadd.f32 %v1576_v5, %v490_v48  ;;  %v436_v59 = vadd.f32 %v1555_v53, %v1576_v5  ;;  %v426_v53 = vadd.f32 %v1543_v47, %v1576_v5 }
 0x12f   :  { %937 = vmatprep.subr.mxu1 %v524_v18  ;;  %v517_v18 = vmax.f32 %v271_v55, 0.0  ;;  %v516_v61 = vmax.f32 %v266_v40, 0.0  ;;  %v543_v55 = vmax.f32 %v401_v44, 0.0  ;;  %v557_v40 = vmax.f32 %v471_v54, 0.0 }
 0x130   :  { %938 = vmatpush3.msra.mxu1 %v508_v20  ;;  %v1635_v10 = vpop.f32.mrf.mxu0  ;;  %v501_v20 = vmax.f32 %v191_v32, 0.0  ;;  %v466_v32 = vadd.f32 %v1581_v11, %v1576_v5  ;;  %v376_v11 = vadd.f32 %v1625_v46, %v1576_v5  ;;  %v366_v46 = vadd.f32 %v1607_v0, %v1576_v5 }
 0x131   :  { %939 = vmatprep.subr.mxu1 %v523_v21  ;;  %v356_v0 = vadd.f32 %v1596_v2, %v1576_v5  ;;  %v346_v2 = vadd.f32 %v1586_v17, %v1576_v5  ;;  %v730_v17 = vld [vmem:[%s1736_s4 + $0x10] sm:$0xff] }
 0x132   :  { %940 = vmatpush3.msra.mxu1 %v507_v25  ;;  %v1094_v15 = vpop.f32.mrf.mxu0  ;;  %v515_v25 = vmax.f32 %v261_v52, 0.0 }
 0x133   :  { %941 = vmatprep.subr.mxu1 %v522_v42  ;;  %v499_v42 = vmax.f32 %v181_v19, 0.0  ;;  %v554_v19 = vmax.f32 %v456_v29, 0.0  ;;  %v532_v47 = vmax.f32 %v346_v2, 0.0 }
 0x134   :  { %942 = vmatpush3.msra.mxu1 %v506_v3  ;;  %v380_v21 = vpop.f32.mrf.mxu0  ;;  %v486_v3 = vadd.f32 %v1124_v57, %v1576_v5 }
 0x135   :  { %943 = vmatprep.subr.mxu1 %v521_v6  ;;  %v546_v6 = vmax.f32 %v416_v27, 0.0  ;;  %v381_v16 = vadd.f32 %v1576_v5, %v380_v21  ;;  %v552_v21 = vmax.f32 %v446_v1, 0.0 }
 0x136   :  { %944 = vmatpush3.msra.mxu1 %v505_v43  ;;  %v1097_v58 = vpop.f32.mrf.mxu0  ;;  %v561_v43 = vmax.f32 %v491_v45, 0.0  ;;  %v560_v35 = vmax.f32 %v486_v3, 0.0  ;;  %v534_v45 = vmax.f32 %v356_v0, 0.0 }
 0x137   :  { %945 = vmatprep.subr.mxu1 %v520_v63  ;;  %v396_v57 = vadd.f32 %v1097_v58, %v1576_v5  ;;  %v476_v63 = vadd.f32 %v1600_v8, %v1576_v5  ;;  %v386_v8 = vadd.f32 %v1094_v15, %v1576_v5  ;;  %v451_v15 = vadd.f32 %v1576_v5, %v1571_v4 }
 0x138   :  { %946 = vmatpush3.msra.mxu1 %v504_v39  ;;  %v390_v31 = vpop.f32.mrf.mxu0  ;;  %v544_v39 = vmax.f32 %v406_v41, 0.0  ;;  %v539_v30 = vmax.f32 %v381_v16, 0.0  ;;  %v441_v4 = vadd.f32 %v1576_v5, %v1567_v62  ;;  %v431_v62 = vadd.f32 %v1576_v5, %v1561_v56 }
 0x139   :  { %947 = vmatprep.subr.mxu1 %v519_v12  ;;  %v542_v38 = vmax.f32 %v396_v57, 0.0  ;;  %v391_v12 = vadd.f32 %v1576_v5, %v390_v31  ;;  %v540_v52 = vmax.f32 %v386_v8, 0.0  ;;  %v553_v48 = vmax.f32 %v451_v15, 0.0 }
 0x13a   :  { %948 = vmatpush3.msra.mxu1 %v503_v13  ;;  %v558_v13 = vmax.f32 %v476_v63, 0.0  ;;  %v551_v27 = vmax.f32 %v441_v4, 0.0  ;;  %v421_v56 = vadd.f32 %v1576_v5, %v1549_v50  ;;  %v1222_v50 = vmov 0.0  }
 0x13b   :  { %949 = vmatprep.subr.mxu1 %v518_v14  ;;  %v541_v14 = vmax.f32 %v391_v12, 0.0 }
 0x13c   :  { %950 = vmatpush3.msra.mxu1 %v502_v60  ;;  %v556_v60 = vmax.f32 %v466_v32, 0.0  ;;  %v547_v3 = vmax.f32 %v421_v56, 0.0 }
 0x13d   :  { %951 = vmatprep.subr.mxu1 %v517_v18  ;;  %v371_v18 = vadd.f32 %v1576_v5, %v1635_v10  ;;  %v361_v10 = vadd.f32 %v1576_v5, %v1615_v36  ;;  %v351_v36 = vadd.f32 %v1576_v5, %v1602_v9  ;;  %v341_v9 = vadd.f32 %v1576_v5, %v1592_v24  ;;  %v731_v5 = vld [vmem:[%s1736_s4 + $0x18] sm:$0xff]  ;;  %v729_v24 = vld [vmem:[%s1736_s4 + $0x8] sm:$0xff] }
 0x13e   :  { %952 = vmatpush3.msra.mxu1 %v501_v20  ;;  %v538_v20 = vmax.f32 %v376_v11, 0.0 }
 0x13f   :  { %953 = vmatprep.subr.mxu1 %v516_v61  ;;  %v537_v61 = vmax.f32 %v371_v18, 0.0  ;;  %v533_v28 = vmax.f32 %v351_v36, 0.0  ;;  %v531_v58 = vmax.f32 %v341_v9, 0.0 }
 0x140   :  { %954 = vmatpush3.msra.mxu1 %v500_v37  ;;  %v536_v37 = vmax.f32 %v366_v46, 0.0 }
 0x141   :  { %955 = vmatprep.subr.mxu1 %v515_v25  ;;  %v535_v25 = vmax.f32 %v361_v10, 0.0 }
 0x142   :  { %956 = vmatpush3.msra.mxu1 %v499_v42  ;;  %v549_v42 = vmax.f32 %v431_v62, 0.0 }
 0x143   :  { %960 = vmatprep.subr.mxu1 %v562_v49  ;;  %651 = vmatmul.mubr.f32.vlgmr.msra.gmra.mxu1 %v1509_v23  ;;  %v559_v23 = vmax.f32 %v481_v34, 0.0  ;;  %v550_v49 = vmax.f32 %v436_v59, 0.0 }
 0x144   :  { %961 = vmatpush3.msra.mxu1 %v546_v6  ;;  %720 = vmatprep.mubr.f32.mxu1 %v581_v33  ;;  %v548_v33 = vmax.f32 %v426_v53, 0.0 }
 0x145   :  { %962 = vmatprep.subr.mxu1 %v561_v43 }
 0x146   :  { %963 = vmatpush3.msra.mxu1 %v545_v7 }
 0x147   :  { %964 = vmatprep.subr.mxu1 %v560_v35 }
 0x148   :  { %965 = vmatpush3.msra.mxu1 %v544_v39 }
 0x149   :  { %966 = vmatprep.subr.mxu1 %v559_v23 }
 0x14a   :  { %967 = vmatpush3.msra.mxu1 %v543_v55 }
 0x14b   :  { %968 = vmatprep.subr.mxu1 %v558_v13 }
 0x14c   :  { %969 = vmatpush3.msra.mxu1 %v542_v38 }
 0x14d   :  { %970 = vmatprep.subr.mxu1 %v557_v40 }
 0x14e   :  { %971 = vmatpush3.msra.mxu1 %v541_v14 }
 0x14f   :  { %972 = vmatprep.subr.mxu1 %v556_v60 }
 0x150   :  { %973 = vmatpush3.msra.mxu1 %v540_v52 }
 0x151   :  { %974 = vmatprep.subr.mxu1 %v555_v22 }
 0x152   :  { %975 = vmatpush3.msra.mxu1 %v539_v30 }
 0x153   :  { %976 = vmatprep.subr.mxu1 %v554_v19 }
 0x154   :  { %977 = vmatpush3.msra.mxu1 %v538_v20 }
 0x155   :  { %978 = vmatprep.subr.mxu1 %v553_v48 }
 0x156   :  { %979 = vmatpush3.msra.mxu1 %v537_v61 }
 0x157   :  { %980 = vmatprep.subr.mxu1 %v552_v21 }
 0x158   :  { %981 = vmatpush3.msra.mxu1 %v536_v37 }
 0x159   :  { %982 = vmatprep.subr.mxu1 %v551_v27 }
 0x15a   :  { %983 = vmatpush3.msra.mxu1 %v535_v25 }
 0x15b   :  { %984 = vmatprep.subr.mxu1 %v550_v49 }
 0x15c   :  { %985 = vmatpush3.msra.mxu1 %v534_v45 }
 0x15d   :  { %986 = vmatprep.subr.mxu1 %v549_v42 }
 0x15e   :  { %987 = vmatpush3.msra.mxu1 %v533_v28 }
 0x15f   :  { %988 = vmatprep.subr.mxu1 %v548_v33 }
 0x160   :  { %989 = vmatpush3.msra.mxu1 %v532_v47 }
 0x161   :  { %990 = vmatprep.subr.mxu1 %v547_v3 }
 0x162   :  { %991 = vmatpush3.msra.mxu1 %v531_v58 }
 0x163   :  { %721 = vmatmul.mubr.f32.vlgmr.msra.gmra.mxu1 %v1513_v26  ;;  %1128 = vmatprep.subr.mxu1 %v1222_v50  ;;  %v728_v26 = vld [vmem:[%s1736_s4] sm:$0xff] }
 0x164   :  { %1129 = vmatpush3.msra.mxu1 %v731_v5  ;;  %1136 = vmatprep.mubr.msk.f32.mxu1 %vm1223_vm0, %v1222_v50 }
 0x165   :  { %1130 = vmatprep.subr.mxu1 %v1222_v50 }
 0x166   :  { %1131 = vmatpush3.msra.mxu1 %v730_v17 }
 0x167   :  { %1132 = vmatprep.subr.mxu1 %v1222_v50 }
 0x168   :  { %1133 = vmatpush3.msra.mxu1 %v729_v24 }
 0x169   :  { %1134 = vmatprep.subr.mxu1 %v1222_v50 }
 0x16a   :  { %1135 = vmatpush3.msra.mxu1 %v728_v26 }
 0x203   :  { %v957_v41 = vpop.f32.mrf.mxu1 }
 0x205   :  { %v958_v6 = vpop.f32.mrf.mxu1 }
 0x206   :  { %v959_v44 = vadd.f32 %v958_v6, %v957_v41 }
 0x223   :  { %v992_v34 = vpop.f32.mrf.mxu1 }
 0x225   :  { %v993_v43 = vpop.f32.mrf.mxu1 }
 0x226   :  { %v994_v7 = vadd.f32 %v993_v43, %v992_v34 }
 0x228   :  { %v723_v57 = vadd.f32 %v994_v7, %v959_v44 }
 0x22a   :  { %1137 = vmatmul.mubr.msk.f32.vlgmr.msra.gmra.mxu1 %vm739_vm1, %v723_v57  ;;  %727 = vst.msk [vmem:[#allocation2] sm:$0x3] %vm726_vm2, %v723_v57 }
 0x22b   :  { %1188 = shalt.err (!%p1185_p4)
}
 0x22c   :  { %823 = dma.vmem_to_hbm [thread:$0]  %s821_s27, 32, %s1738_s6, [#allocation3]   ;;  %v843_v63 = vld [vmem:[%s1737_s5] ss:$0 sm:$0xff] }
 0x22d   :  { %s1225_s9 = smov [#allocation4]  }
 0x22e   :  { %s830_s10 = sshll.u32 %s1225_s9, 4  ;;  %s831_s10 = int_to_ptr.vmem [resolvable:$true] %s830_s10 }
 0x22f   :  { %s1197_s11 = scalar_lea.vmem %s831_s10, 32  ;;  %p1202_p6 = scmp.lt.s32.totalorder %s831_s10, %s831_s10 }
 0x230   :  { %p1198_p5 = scmp.ne.s32.totalorder %s831_s10, %s1197_s11  ;;  %p1203_p7 = scmp.lt.s32.totalorder %s1197_s11, %s1197_s11 }
 0x232   :  { %p1204_p8 = por %p1203_p7, %p1202_p6 }
 0x234   :  { %p1205_p9 = pnand %p1204_p8, %p1198_p5 }
 0x2ea   :  { %v809_v35 = vpop.f32.mrf.mxu1 }
 0x2eb   :  { %v810_v31 = vadd.f32 %v843_v63, %v809_v35 }
 0x2ec   :  { %v1138_v39 = vpop.f32.mrf.mxu1 }
 0x2ed   :  { %813 = vst [vmem:[#allocation4] sm:$0x3] %v810_v31 }
 0x2ee   :  { %1208 = shalt.err (!%p1205_p9)
}
 0x2ef   :  { %833 = dma.vmem_to_hbm [thread:$0]  %s831_s10, 32, %s1739_s7, [#allocation5]  }
 0x2f0   :  { %1217 = dma.done.wait [#allocation3], 32  }
 0x2f1   :  { %1218 = vsyncadd [#allocation3], 4294967264 }
 0x2f2   :  { %1219 = dma.done.wait [#allocation5], 32  }
 0x2f3   :  { %1220 = vsyncadd [#allocation5], 4294967264 }
 0x2f4   :  { %840 = vsyncpa [#allocation3], 1 }
 0x2f5   :  { %841 = vsyncpa [#allocation5], 1 }

</bundles_post_ra>
